<compile_context>
chip_gen: v5e
topology: v5e:2x2
jax: 0.10.0
libtpu: 0.0.40
codegen_flags: <defaults>
</compile_context>

<pallas_src>
import jax
import jax.numpy as jnp
from jax.experimental import pallas as pl
from jax.experimental.pallas import tpu as pltpu


_LANES = 128                              # vreg lane width
_ROW_ALIGN = 32                           # covers (8,128)/(16,128)/(32,128) min tiles
_TARGET_BLOCK_BYTES = 4 * 1024 * 1024     # ~4 MiB/block: good on v5e/v6e, capped for v7x
_VMEM_LIMIT_BYTES = 32 * 1024 * 1024      # in+out double buffered 4 MiB blocks = 16 MiB


def _clip_kernel(x_ref, o_ref):
    # Pure VPU elementwise: min(max(x, 0), 255)  (matches torch.clip, incl. NaN prop.)
    x = x_ref[...]
    lo = jnp.asarray(0.0, x.dtype)
    hi = jnp.asarray(255.0, x.dtype)
    o_ref[...] = jnp.minimum(jnp.maximum(x, lo), hi)


def clip_pallas(x):
    """Clip x to [0, 255] elementwise. Matches torch.clip(x, 0.0, 255.0)."""
    orig_shape = x.shape
    dtype = x.dtype
    n = x.size
    if n == 0:
        return x

    itemsize = jnp.dtype(dtype).itemsize

    # ---- choose a pad-free 2-D view -------------------------------------
    if n % _LANES == 0:
        cols = _LANES
        rows = n // _LANES
    else:
        # Fall back to the natural trailing dim; the block spans the full last
        # dim so no (8,128) alignment / padding is required.
        cols = orig_shape[-1] if x.ndim >= 1 else 1
        rows = n // cols
    x2d = x.reshape(rows, cols)

    # ---- choose block rows (target ~4 MiB per block) ---------------------
    max_rows_by_bytes = max(_TARGET_BLOCK_BYTES // (cols * itemsize), 1)
    if rows <= max_rows_by_bytes:
        # Single (or full-height) block; "block == full array dim" is always legal.
        block_rows = rows
    else:
        # Tile the rows; keep a multiple of 32 so f32/bf16/int8 all stay on
        # native sublane tiling. Tail blocks are masked by Pallas automatically.
        block_rows = max((max_rows_by_bytes // _ROW_ALIGN) * _ROW_ALIGN, _ROW_ALIGN)

    grid = (pl.cdiv(rows, block_rows),)

    out2d = pl.pallas_call(
        _clip_kernel,
        out_shape=jax.ShapeDtypeStruct((rows, cols), dtype),
        grid_spec=pltpu.PrefetchScalarGridSpec(
            num_scalar_prefetch=0,
            grid=grid,
            in_specs=[pl.BlockSpec((block_rows, cols), lambda i: (i, 0))],
            out_specs=pl.BlockSpec((block_rows, cols), lambda i: (i, 0)),
        ),
        compiler_params=pltpu.CompilerParams(
            dimension_semantics=("parallel",),
            vmem_limit_bytes=_VMEM_LIMIT_BYTES,
        ),
    )(x2d)

    # Reshape back (metadata-only, no extra HBM pass).
    return out2d.reshape(orig_shape)


if __name__ == "__main__":
    key = jax.random.PRNGKey(0)

    # Small NCHW input consistent with the module's usage (image-like tensor).
    x = jax.random.uniform(key, (2, 4, 16, 16), dtype=jnp.float32,
                           minval=-100.0, maxval=400.0)
    y = jax.block_until_ready(clip_pallas(x))
    y_ref = jnp.clip(x, 0.0, 255.0)
    assert y.shape == x.shape and y.dtype == x.dtype
    assert bool(jnp.array_equal(y, y_ref))

    # Odd-sized input (numel not a multiple of 128) exercises the pad-free
    # full-array-block fallback path.
    x_odd = jax.random.uniform(jax.random.PRNGKey(1), (3, 5, 7),
                               dtype=jnp.float32, minval=-300.0, maxval=300.0)
    y_odd = jax.block_until_ready(clip_pallas(x_odd))
    assert bool(jnp.array_equal(y_odd, jnp.clip(x_odd, 0.0, 255.0)))

    print("KERNEL_OK")
</pallas_src>

<mosaic_0001>
module attributes {stable_mosaic.version = 11 : i64} {
  func.func @_clip_kernel(%arg0: i32, %arg1: memref<16x128xf32, #tpu.memory_space<vmem>>, %arg2: memref<16x128xf32, #tpu.memory_space<vmem>>) attributes {dimension_semantics = [#tpu.dimension_semantics<parallel>], iteration_bounds = array<i64: 1>, scalar_prefetch = 0 : i64, scratch_operands = 0 : i64, tpu.core_type = #tpu.core_type<tc>, window_params = [{transform_indices = @transform_0, window_bounds = array<i64: 16, 128>}, {transform_indices = @transform_1, window_bounds = array<i64: 16, 128>}]} {
    %c0 = arith.constant 0 : index
    %c0_0 = arith.constant 0 : index
    %0 = vector.load %arg1[%c0, %c0_0] : memref<16x128xf32, #tpu.memory_space<vmem>>, vector<16x128xf32>
    %cst = arith.constant 0.000000e+00 : f32
    %1 = vector.broadcast %cst : f32 to vector<16x128xf32>
    %2 = arith.maximumf %0, %1 : vector<16x128xf32>
    %cst_1 = arith.constant 2.550000e+02 : f32
    %3 = vector.broadcast %cst_1 : f32 to vector<16x128xf32>
    %4 = arith.minimumf %2, %3 : vector<16x128xf32>
    %c0_2 = arith.constant 0 : index
    %c0_3 = arith.constant 0 : index
    %5 = vector.load %arg2[%c0_2, %c0_3] : memref<16x128xf32, #tpu.memory_space<vmem>>, vector<16x128xf32>
    tpu.vector_store %arg2[%c0_2, %c0_3], %4 {strides = array<i32>} : memref<16x128xf32, #tpu.memory_space<vmem>>, vector<16x128xf32>,
    return
  }
  func.func @transform_0(%arg0: i32) -> (i32, i32) {
    %c0_i32 = arith.constant 0 : i32
    %c0_i32_0 = arith.constant 0 : i32
    return %arg0, %c0_i32 : i32, i32
  }
  func.func @transform_1(%arg0: i32) -> (i32, i32) {
    %c0_i32 = arith.constant 0 : i32
    %c0_i32_0 = arith.constant 0 : i32
    return %arg0, %c0_i32 : i32, i32
  }
}

</mosaic_0001>

<bundles_post_ra>
// kernel: tpu_custom_call.1
= control target key start
LH: loop header
LB: loop body
LE: loop exit
PB: predicated region body
PF: predicated region fallthrough
CT: control target
= control target key end

     0   :  { %6 = vsyncpa [#allocation3], 0  ;;  %s128_s0 = inlined_call_operand.hbm [shape: f32[16,128], index: 0, kind: input, shape index: {}]   ;;  %s129_s1 = inlined_call_operand.hbm [shape: f32[16,128], index: 1, kind: output, shape index: {}]  }
   0x1   :  { %7 = vsyncpa [#allocation4], 0  ;;  %s12_s8 = sshll.u32 %s128_s0, 4  ;;  %s108_s9 = smov [#allocation2]   ;;  %s13_s8 = int_to_ptr.hbm [resolvable:$true] %s12_s8 }
   0x2   :  { %s14_s10 = sshll.u32 %s108_s9, 4  ;;  %s109_s11 = smov 128   ;;  %s15_s10 = int_to_ptr.vmem [resolvable:$true] %s14_s10 }
   0x3   :  { %s110_s12 = smov 8  }
   0x4   :  { %20 = dma.hbm_to_vmem [thread:$0]  %s13_s8, 256, %s15_s10, [#allocation3], %s109_s11, %s109_s11, %s110_s12  }
   0x5   :  { %104 = dma.done.wait [#allocation3], 256  }
   0x6   :  { %105 = vsyncadd [#allocation3], 4294967040  ;;  %v25_v0 = vld [vmem:[#allocation2] sm:$0xff]  ;;  %v26_v1 = vld [vmem:[#allocation2 + $0x8] sm:$0xff]  ;;  %s111_s13 = smov [#allocation5]   ;;  %s39_s17 = sshll.u32 %s129_s1, 4  ;;  %s40_s17 = int_to_ptr.hbm [resolvable:$true] %s39_s17 }
   0x7   :  { %v27_v2 = vmax.f32 %v25_v0, 0.0  ;;  %v28_v3 = vmax.f32 %v26_v1, 0.0  ;;  %s37_s14 = sshll.u32 %s111_s13, 4  ;;  %s38_s14 = int_to_ptr.vmem [resolvable:$true] %s37_s14 }
   0x9   :  { %v29_v4 = vmin.f32 %v27_v2, 255.0  ;;  %v30_v5 = vmin.f32 %v28_v3, 255.0 }
   0xb   :  { %31 = vst [vmem:[#allocation5] sm:$0xff] %v29_v4 }
   0xc   :  { %32 = vst [vmem:[#allocation5 + $0x8] sm:$0xff] %v30_v5 }
   0xd   :  { %45 = dma.vmem_to_hbm [thread:$0]  %s38_s14, 256, %s40_s17, [#allocation4], %s109_s11, %s109_s11, %s110_s12  }
   0xe   :  { %106 = dma.done.wait [#allocation4], 256  }
   0xf   :  { %107 = vsyncadd [#allocation4], 4294967040 }
  0x10   :  { %50 = vsyncpa [#allocation3], 1 }
  0x11   :  { %51 = vsyncpa [#allocation4], 1 }

</bundles_post_ra>
